<compile_context>
chip_gen: v5e
topology: v5e:2x2
jax: 0.10.0
libtpu: 0.0.40
codegen_flags: <defaults>
</compile_context>

<pallas_src>
import jax
import jax.numpy as jnp
from jax.experimental import pallas as pl
from jax.experimental.pallas import tpu as pltpu


def _round_up(n, m):
    return ((n + m - 1) // m) * m


def mlp_kernel(x_ref, w1_ref, b1_ref, w2_ref, b2_ref, o_ref):
    # Layer 1: Linear + ReLU (MXU matmul, f32 accumulate). h stays in vregs/VMEM.
    h = jnp.dot(x_ref[...], w1_ref[...], preferred_element_type=jnp.float32)
    h = jnp.maximum(h + b1_ref[...], 0.0)
    # Layer 2: Linear + Sigmoid (sigmoid's exp lowers to the EUP slot).
    y = jnp.dot(h, w2_ref[...], preferred_element_type=jnp.float32)
    o_ref[...] = jax.nn.sigmoid(y + b2_ref[...]).astype(o_ref.dtype)


def prepare_params(w1, b1, w2, b2):
    """One-time parameter prep (hoisted out of the per-call forward)."""
    return w1, b1.reshape(1, -1), w2, b2.reshape(1, -1)


def neural_network5_forward(x, w1, b1_2d, w2, b2_2d, *, block_b=1024, small_batch=512):
    """Pallas forward pass for NeuralNetwork5.

    x     : (B, input_dim) f32
    w1    : (input_dim, hidden_dim),  b1_2d: (1, hidden_dim)
    w2    : (hidden_dim, output_dim), b2_2d: (1, output_dim)
    returns (B, output_dim) f32
    """
    B, in_dim = x.shape
    hidden_dim = w1.shape[1]
    output_dim = w2.shape[1]

    if B <= small_batch:
        # Tiny batch: single invocation, whole arrays resident in VMEM, no grid,
        # no pipeline prologue/epilogue overhead, true-width (un-padded) output.
        return pl.pallas_call(
            mlp_kernel,
            out_shape=jax.ShapeDtypeStruct((B, output_dim), x.dtype),
            in_specs=[pl.BlockSpec(memory_space=pltpu.MemorySpace.VMEM)] * 5,
            out_specs=pl.BlockSpec(memory_space=pltpu.MemorySpace.VMEM),
        )(x, w1, b1_2d, w2, b2_2d)

    # Realistic batch: tile B. Clamp block_b so the "parallel" grid has >= 2 steps
    # (v7x megacore: both TensorCores get grid steps); keep it a multiple of 8.
    bb = min(block_b, _round_up(pl.cdiv(B, 2), 8))
    grid = (pl.cdiv(B, bb),)

    flops = 2 * B * in_dim * hidden_dim + 2 * B * hidden_dim * output_dim
    bytes_accessed = 4 * (x.size + w1.size + b1_2d.size + w2.size + b2_2d.size
                          + B * output_dim)
    cost = pl.CostEstimate(flops=flops,
                           transcendentals=B * output_dim,
                           bytes_accessed=bytes_accessed)

    return pl.pallas_call(
        mlp_kernel,
        out_shape=jax.ShapeDtypeStruct((B, output_dim), x.dtype),
        grid=grid,
        in_specs=[
            pl.BlockSpec((bb, in_dim), lambda i: (i, 0)),
            # Constant block index -> weights/biases stay VMEM-resident across steps.
            pl.BlockSpec((in_dim, hidden_dim), lambda i: (0, 0)),
            pl.BlockSpec((1, hidden_dim), lambda i: (0, 0)),
            pl.BlockSpec((hidden_dim, output_dim), lambda i: (0, 0)),
            pl.BlockSpec((1, output_dim), lambda i: (0, 0)),
        ],
        out_specs=pl.BlockSpec((bb, output_dim), lambda i: (i, 0)),
        compiler_params=pltpu.CompilerParams(
            dimension_semantics=("parallel",)),
        cost_estimate=cost,
    )(x, w1, b1_2d, w2, b2_2d)


if __name__ == "__main__":
    # Shapes implied by the module: x (batch, input_dim) -> hidden -> output
    batch, input_dim, hidden_dim, output_dim = 8, 32, 64, 16

    key = jax.random.PRNGKey(0)
    kx, kw1, kb1, kw2, kb2, kx_big = jax.random.split(key, 6)

    x = jax.random.normal(kx, (batch, input_dim), dtype=jnp.float32)

    # Deterministic PyTorch-style init: uniform(-1/sqrt(fan_in), 1/sqrt(fan_in))
    lim1 = 1.0 / jnp.sqrt(jnp.float32(input_dim))
    w1 = jax.random.uniform(kw1, (input_dim, hidden_dim), jnp.float32, -lim1, lim1)
    b1 = jax.random.uniform(kb1, (hidden_dim,), jnp.float32, -lim1, lim1)

    lim2 = 1.0 / jnp.sqrt(jnp.float32(hidden_dim))
    w2 = jax.random.uniform(kw2, (hidden_dim, output_dim), jnp.float32, -lim2, lim2)
    b2 = jax.random.uniform(kb2, (output_dim,), jnp.float32, -lim2, lim2)

    # One-time parameter prep (hoisted out of the jitted forward).
    w1_p, b1_p, w2_p, b2_p = prepare_params(w1, b1, w2, b2)

    fwd = jax.jit(neural_network5_forward)

    def ref_fn(xx):
        return jax.nn.sigmoid(jnp.maximum(xx @ w1 + b1, 0.0) @ w2 + b2)

    # Small-batch (no-grid) path.
    out = jax.block_until_ready(fwd(x, w1_p, b1_p, w2_p, b2_p))
    assert out.shape == (batch, output_dim)
    assert jnp.allclose(out, ref_fn(x), atol=1e-5, rtol=1e-5)

    # Batch-tiled "parallel" path (exercises grid + adaptive block_b; 4096/1024 = 4 steps).
    x_big = jax.random.normal(kx_big, (4096, input_dim), dtype=jnp.float32)
    out_big = jax.block_until_ready(fwd(x_big, w1_p, b1_p, w2_p, b2_p))
    assert out_big.shape == (4096, output_dim)
    assert jnp.allclose(out_big, ref_fn(x_big), atol=1e-5, rtol=1e-5)

    print("KERNEL_OK")
</pallas_src>

<mosaic_0001>
module attributes {stable_mosaic.version = 11 : i64} {
  func.func @mlp_kernel(%arg0: memref<8x32xf32, #tpu.memory_space<vmem>>, %arg1: memref<32x64xf32, #tpu.memory_space<vmem>>, %arg2: memref<1x64xf32, #tpu.memory_space<vmem>>, %arg3: memref<64x16xf32, #tpu.memory_space<vmem>>, %arg4: memref<1x16xf32, #tpu.memory_space<vmem>>, %arg5: memref<8x16xf32, #tpu.memory_space<vmem>>) attributes {dimension_semantics = [], scalar_prefetch = 0 : i64, scratch_operands = 0 : i64, tpu.core_type = #tpu.core_type<tc>} {
    %c0 = arith.constant 0 : index
    %c0_0 = arith.constant 0 : index
    %0 = vector.load %arg0[%c0, %c0_0] : memref<8x32xf32, #tpu.memory_space<vmem>>, vector<8x32xf32>
    %c0_1 = arith.constant 0 : index
    %c0_2 = arith.constant 0 : index
    %1 = vector.load %arg1[%c0_1, %c0_2] : memref<32x64xf32, #tpu.memory_space<vmem>>, vector<32x64xf32>
    %cst = arith.constant dense<0.000000e+00> : vector<8x64xf32>
    %2 = tpu.matmul %0, %1, %cst {dimension_numbers = #tpu.dot_dimension_numbers<[1], [0], [0], [1], [0, 0, 1, 1], [], []>} : vector<8x32xf32>, vector<32x64xf32>, vector<8x64xf32> -> vector<8x64xf32>
    %c0_3 = arith.constant 0 : index
    %c0_4 = arith.constant 0 : index
    %3 = vector.load %arg2[%c0_3, %c0_4] : memref<1x64xf32, #tpu.memory_space<vmem>>, vector<1x64xf32>
    %4 = vector.broadcast %3 : vector<1x64xf32> to vector<8x64xf32>
    %5 = arith.addf %2, %4 : vector<8x64xf32>
    %cst_5 = arith.constant 0.000000e+00 : f32
    %6 = vector.broadcast %cst_5 : f32 to vector<8x64xf32>
    %7 = arith.maximumf %5, %6 : vector<8x64xf32>
    %c0_6 = arith.constant 0 : index
    %c0_7 = arith.constant 0 : index
    %8 = vector.load %arg3[%c0_6, %c0_7] : memref<64x16xf32, #tpu.memory_space<vmem>>, vector<64x16xf32>
    %cst_8 = arith.constant dense<0.000000e+00> : vector<8x16xf32>
    %9 = tpu.matmul %7, %8, %cst_8 {dimension_numbers = #tpu.dot_dimension_numbers<[1], [0], [0], [1], [0, 0, 1, 1], [], []>} : vector<8x64xf32>, vector<64x16xf32>, vector<8x16xf32> -> vector<8x16xf32>
    %c0_9 = arith.constant 0 : index
    %c0_10 = arith.constant 0 : index
    %10 = vector.load %arg4[%c0_9, %c0_10] : memref<1x16xf32, #tpu.memory_space<vmem>>, vector<1x16xf32>
    %11 = vector.broadcast %10 : vector<1x16xf32> to vector<8x16xf32>
    %12 = arith.addf %9, %11 : vector<8x16xf32>
    %13 = arith.negf %12 : vector<8x16xf32>
    %14 = math.exp %13 : vector<8x16xf32>
    %cst_11 = arith.constant 1.000000e+00 : f32
    %15 = vector.broadcast %cst_11 : f32 to vector<8x16xf32>
    %16 = arith.addf %15, %14 : vector<8x16xf32>
    %17 = arith.divf %15, %16 : vector<8x16xf32>
    %c0_12 = arith.constant 0 : index
    %c0_13 = arith.constant 0 : index
    %18 = vector.load %arg5[%c0_12, %c0_13] : memref<8x16xf32, #tpu.memory_space<vmem>>, vector<8x16xf32>
    tpu.vector_store %arg5[%c0_12, %c0_13], %17 {strides = array<i32>} : memref<8x16xf32, #tpu.memory_space<vmem>>, vector<8x16xf32>,
    return
  }
}

</mosaic_0001>

<bundles_post_ra>
// kernel: neural_network5_forward.1
= control target key start
LH: loop header
LB: loop body
LE: loop exit
PB: predicated region body
PF: predicated region fallthrough
CT: control target
= control target key end

     0   :  { %s243_s0 = inlined_call_operand.vmem [shape: f32[8,32], index: 0, kind: input, shape index: {}]   ;;  %s244_s1 = inlined_call_operand.vmem [shape: f32[32,64], index: 1, kind: input, shape index: {}]   ;;  %s245_s2 = inlined_call_operand.vmem [shape: f32[1,64], index: 2, kind: input, shape index: {}]   ;;  %s246_s3 = inlined_call_operand.vmem [shape: f32[64,16], index: 3, kind: input, shape index: {}]   ;;  %s247_s4 = inlined_call_operand.vmem [shape: f32[1,16], index: 4, kind: input, shape index: {}]   ;;  %s248_s5 = inlined_call_operand.hbm [shape: f32[8,16], index: 5, kind: output, shape index: {}]  }
   0x1   :  { %v25_v0 = vld [vmem:[%s244_s1 + $0x18] sm:$0xff]  ;;  %v24_v1 = vld [vmem:[%s244_s1 + $0x10] sm:$0xff]  ;;  %v23_v3 = vld [vmem:[%s244_s1 + $0x8] sm:$0xff] }
   0x2   :  { %46 = vmatpush.msra.mxu0 %v25_v0  ;;  %v62_v2 = vld [vmem:[%s246_s3 + $0x38] sm:$0xff]  ;;  %v61_v4 = vld [vmem:[%s246_s3 + $0x30] sm:$0xff]  ;;  %v60_v5 = vld [vmem:[%s246_s3 + $0x28] sm:$0xff] }
   0x3   :  { %79 = vmatpush.msra.mxu1 %v62_v2  ;;  %v22_v6 = vld [vmem:[%s244_s1] sm:$0xff] }
   0x4   :  { %47 = vmatpush.msra.mxu0 %v24_v1 }
   0x5   :  { %80 = vmatpush.msra.mxu1 %v61_v4 }
   0x6   :  { %10 = vsyncpa [#allocation3], 0  ;;  %48 = vmatpush.msra.mxu0 %v23_v3  ;;  %v21_v7 = vld [vmem:[%s243_s0] sm:$0xff]  ;;  %vm30_vm0 = vcmask 261120   ;;  %v58_v9 = vld [vmem:[%s246_s3 + $0x18] sm:$0xff]  ;;  %vm67_vm1 = vcmask 523264  }
   0x7   :  { %v59_v8 = vld [vmem:[%s246_s3 + $0x20] sm:$0xff]  ;;  %81 = vmatpush.msra.mxu1 %v60_v5  ;;  %v57_v10 = vld [vmem:[%s246_s3 + $0x10] sm:$0xff]  ;;  %v56_v11 = vld [vmem:[%s246_s3 + $0x8] sm:$0xff]  ;;  %vm110_vm5 = vcmask 130048  }
   0x8   :  { %49 = vmatpush.msra.mxu0 %v22_v6  ;;  %v55_v12 = vld [vmem:[%s246_s3] sm:$0xff] }
   0x9   :  { %128 = vmatmul.msk.f32.vlgmr.msra.gmra.mxu0 %vm30_vm0, %v21_v7  ;;  %82 = vmatpush.msra.mxu1 %v59_v8  ;;  %v132_v13 = vld [vmem:[%s245_s2] ss:$0 sm:$0xff]  ;;  %s164_s2 = smov [#allocation2]  }
   0xa   :  { %v133_v17 = vld [vmem:[%s247_s4] ss:$0 sm:$0xff]  ;;  %s117_s3 = sshll.u32 %s164_s2, 4  ;;  %s119_s4 = sshll.u32 %s248_s5, 4  ;;  %s118_s3 = int_to_ptr.vmem [resolvable:$true] %s117_s3  ;;  %s120_s4 = int_to_ptr.hbm [resolvable:$true] %s119_s4 }
   0xb   :  { %83 = vmatpush.msra.mxu1 %v58_v9 }
   0xd   :  { %84 = vmatpush.msra.mxu1 %v57_v10 }
   0xf   :  { %85 = vmatpush.msra.mxu1 %v56_v11 }
  0x11   :  { %86 = vmatpush.msra.mxu1 %v55_v12 }
  0x86   :  { %v51_v14 = vpop.f32.mrf.mxu0 }
  0x87   :  { %v52_v15 = vadd.f32 %v132_v13, %v51_v14 }
  0x89   :  { %v54_v16 = vmax.f32 %v52_v15, 0.0 }
  0x8b   :  { %129 = vmatmul.msk.f32.vlgmr.msra.gmra.mxu1 %vm67_vm1, %v54_v16 }
 0x108   :  { %v88_v18 = vpop.f32.mrf.mxu1 }
 0x109   :  { %v89_v19 = vadd.f32 %v133_v17, %v88_v18 }
 0x10b   :  { %v130_v20 = vmul.f32 -1.442695, %v89_v19 }
 0x10d   :  { %134 = vpow2.f32 %v130_v20 }
 0x113   :  { %v135_v21 = vpop.eup %134 }
 0x114   :  { %v94_v22 = vadd.f32 1.0, %v135_v21 }
 0x116   :  { %136 = vrcp.f32 %v94_v22  ;;  %v106_v26 = vand.u32 2147483648, %v94_v22  ;;  %v104_v28 = vand.u32 2147483647, %v94_v22  ;;  %vm100_vm3 = vweird.f32 %v94_v22 }
 0x118   :  { %v107_v30 = vor.u32 1.1754944e-38, %v106_v26  ;;  %vm105_vm6 = vcmp.eq.f32.partialorder %v104_v28, 8.507059e+37 }
 0x11c   :  { %v137_v23 = vpop.eup %136 }
 0x11d   :  { %v96_v24 = vmul.f32 %v137_v23, %v94_v22  ;;  %vm101_vm2 = vweird.f32 %v137_v23 }
 0x11e   :  { %vm102_vm4 = vmor %vm100_vm3, %vm101_vm2 }
 0x11f   :  { %v97_v25 = vsub.f32 1.0, %v96_v24 }
 0x121   :  { %v98_v27 = vmul.f32 %v137_v23, %v97_v25 }
 0x123   :  { %v99_v29 = vadd.f32 %v137_v23, %v98_v27 }
 0x125   :  { %v103_v31 = vsel %vm102_vm4, %v137_v23, %v99_v29 }
 0x126   :  { %v108_v32 = vsel %vm105_vm6, %v107_v30, %v103_v31 }
 0x127   :  { %111 = vst.msk [vmem:[#allocation2] sm:$0xff] %vm110_vm5, %v108_v32 }
 0x128   :  { %122 = dma.vmem_to_hbm [thread:$0]  %s118_s3, 128, %s120_s4, [#allocation3]  }
 0x129   :  { %162 = dma.done.wait [#allocation3], 128  }
 0x12a   :  { %163 = vsyncadd [#allocation3], 4294967168 }
 0x12b   :  { %127 = vsyncpa [#allocation3], 1 }

</bundles_post_ra>
